<compile_context>
chip_gen: v5e
topology: v5e:2x2
jax: 0.10.0
libtpu: 0.0.40
codegen_flags: <defaults>
</compile_context>

<pallas_src>
import jax
import jax.numpy as jnp
from jax.experimental import pallas as pl
from jax.experimental.pallas import tpu as pltpu


def _round_up(n, m):
    return pl.cdiv(n, m) * m


def _vmem_limit_bytes(resident_bytes, pipelined_bytes):
    """Scoped-VMEM budget: single-buffered resident tables + double-buffered
    pipelined tiles + slack, capped below the generation's physical VMEM."""
    try:
        cap = pltpu.get_tpu_info().vmem_capacity_bytes
    except Exception:  # interpret mode / query unavailable
        cap = 64 << 20  # assume v7x per-TensorCore VMEM (smallest of the fleet)
    needed = int(resident_bytes) + int(pipelined_bytes) + (4 << 20)
    # Never go below the default scoped limit; never exceed ~7/8 of physical.
    return int(min(max(needed, 32 << 20), (cap * 7) // 8))


# ---------------------------------------------------------------------------
# Path A: one-hot MXU gather (small vocabularies).
# ---------------------------------------------------------------------------
def _bi_embedding_onehot_kernel(x_ref, node_tab_ref, feat_tab_ref, out_ref):
    """x_ref        : (TB, 2) int32 VMEM block (col 0 = node id, col 1 = feature id)
       node_tab_ref : (Vn_pad, H) VMEM, whole table resident (vocab padded to 128)
       feat_tab_ref : (Vf_pad, H) VMEM, whole table resident
       out_ref      : (TB, 2*H) dense output tile."""
    tb = x_ref.shape[0]
    hidden = node_tab_ref.shape[1]
    vn = node_tab_ref.shape[0]
    vf = feat_tab_ref.shape[0]
    tab_dtype = node_tab_ref.dtype

    node_ids = x_ref[:, 0:1]  # (TB, 1) int32
    feat_ids = x_ref[:, 1:2]  # (TB, 1) int32

    # One-hot built on the VPU; an out-of-range index yields an all-zero row
    # (nn.Embedding requires in-range indices anyway).
    onehot_n = (jax.lax.broadcasted_iota(jnp.int32, (tb, vn), 1)
                == node_ids).astype(tab_dtype)
    onehot_f = (jax.lax.broadcasted_iota(jnp.int32, (tb, vf), 1)
                == feat_ids).astype(tab_dtype)

    # MXU gathers: (TB, V) @ (V, H) -> (TB, H), f32 accumulation.
    node_emb = jnp.dot(onehot_n, node_tab_ref[...],
                       preferred_element_type=jnp.float32)
    feat_emb = jnp.dot(onehot_f, feat_tab_ref[...],
                       preferred_element_type=jnp.float32)

    # Two dense (TB, H) tile stores realize the concat in-place.
    out_ref[:, 0:hidden] = node_emb.astype(out_ref.dtype)
    out_ref[:, hidden:2 * hidden] = feat_emb.astype(out_ref.dtype)


# ---------------------------------------------------------------------------
# Path B: per-row gather from VMEM-resident tables (larger vocabularies).
# ---------------------------------------------------------------------------
def _bi_embedding_gather_kernel(x_ref, node_tab_ref, feat_tab_ref,
                                out_node_ref, out_feat_ref):
    """x_ref        : (2*Bp,) int32 in SMEM (scalar prefetch), row-major flattened
                      [node0, feat0, node1, feat1, ...]
       node_tab_ref : (n_nodes, H)    VMEM, whole table resident
       feat_tab_ref : (n_features, H) VMEM, whole table resident
       out_node_ref : (TB, H) node-embedding rows for this batch tile
       out_feat_ref : (TB, H) feature-embedding rows for this batch tile."""
    tb = out_node_ref.shape[0]
    base = pl.program_id(0) * tb

    def body(r, carry):
        row = base + r
        nidx = x_ref[2 * row]
        fidx = x_ref[2 * row + 1]
        # NOTE: indices assumed in-range (nn.Embedding contract); no runtime
        # bounds check exists on VMEM refs.
        out_node_ref[pl.ds(r, 1), :] = node_tab_ref[pl.ds(nidx, 1), :]
        out_feat_ref[pl.ds(r, 1), :] = feat_tab_ref[pl.ds(fidx, 1), :]
        return carry

    jax.lax.fori_loop(0, tb, body, 0, unroll=8)


# ---------------------------------------------------------------------------
# Wrapper.
# ---------------------------------------------------------------------------
def bi_embedding_cat(x, node_table, feat_table, *, tile_b=256,
                     onehot_max_vocab=1024):
    """x: [B, 2] integer indices; node_table: [n_nodes, H]; feat_table: [n_features, H].

    Returns [B, 2*H] = concat(node_table[x[:, 0]], feat_table[x[:, 1]], -1).
    """
    assert node_table.dtype == feat_table.dtype, (
        "embedding tables must share a dtype (output dtype is taken from them)")
    assert node_table.shape[1] == feat_table.shape[1], "hidden dims must match"
    assert tile_b % 8 == 0, "tile_b must be a multiple of the sublane width (8)"

    B = x.shape[0]
    H = node_table.shape[1]
    out_dtype = node_table.dtype
    itemsize = jnp.dtype(out_dtype).itemsize

    # Batch tiling: one big tile when B is modest, otherwise tile_b rows/step.
    if B <= tile_b:
        TB = _round_up(max(B, 1), 8)
    else:
        TB = tile_b
    Bp = _round_up(B, TB)
    num_tiles = Bp // TB

    x_i32 = x.astype(jnp.int32)
    if Bp != B:
        # Padded rows gather index 0 (always valid) and are sliced away below.
        x_i32 = jnp.pad(x_i32, ((0, Bp - B), (0, 0)))

    use_onehot = max(node_table.shape[0], feat_table.shape[0]) <= onehot_max_vocab

    if use_onehot:
        # ------------------------------------------------------------------
        # One-hot MXU gather. Pad each vocab up to a multiple of 128 so the
        # one-hot contraction matches the MXU width on every generation
        # (v5e = 128-wide). Padded table rows are zero and never selected.
        # ------------------------------------------------------------------
        vn_pad = _round_up(node_table.shape[0], 128)
        vf_pad = _round_up(feat_table.shape[0], 128)
        node_p = node_table
        if vn_pad != node_table.shape[0]:
            node_p = jnp.pad(node_table,
                             ((0, vn_pad - node_table.shape[0]), (0, 0)))
        feat_p = feat_table
        if vf_pad != feat_table.shape[0]:
            feat_p = jnp.pad(feat_table,
                             ((0, vf_pad - feat_table.shape[0]), (0, 0)))

        resident_bytes = (vn_pad + vf_pad) * H * itemsize
        tile_bytes = 2 * (TB * 2 * 4 + TB * 2 * H * itemsize)  # x + out, double-buffered
        vmem_limit = _vmem_limit_bytes(resident_bytes, tile_bytes)

        grid_spec = pltpu.PrefetchScalarGridSpec(
            num_scalar_prefetch=0,
            grid=(num_tiles,),
            in_specs=[
                pl.BlockSpec((TB, 2), lambda i: (i, 0)),
                # Whole embedding tables resident in VMEM (single-buffered).
                pl.BlockSpec(memory_space=pltpu.MemorySpace.VMEM),
                pl.BlockSpec(memory_space=pltpu.MemorySpace.VMEM),
            ],
            out_specs=pl.BlockSpec((TB, 2 * H), lambda i: (i, 0)),
        )

        out = pl.pallas_call(
            _bi_embedding_onehot_kernel,
            out_shape=jax.ShapeDtypeStruct((Bp, 2 * H), out_dtype),
            grid_spec=grid_spec,
            compiler_params=pltpu.CompilerParams(
                # Disjoint output tiles, tiny resident tables -> megacore OK.
                dimension_semantics=("parallel",),
                vmem_limit_bytes=vmem_limit,
            ),
        )(x_i32, node_p, feat_p)
        return out[:B]

    # ----------------------------------------------------------------------
    # Row-gather path for larger vocabularies (tables still VMEM-resident).
    # ----------------------------------------------------------------------
    resident_bytes = (node_table.size + feat_table.size) * itemsize
    tile_bytes = 2 * (2 * TB * H * itemsize)  # two double-buffered output tiles
    vmem_limit = _vmem_limit_bytes(resident_bytes, tile_bytes)
    # On v7x "parallel" duplicates the resident tables into both TensorCores'
    # VMEM and doubles the table HBM traffic; prefer a single core for big tables.
    semantics = "parallel" if resident_bytes <= (24 << 20) else "arbitrary"

    # 1-D int32 indices for SMEM scalar prefetch (avoids (B, 2) SMEM padding).
    x_flat = x_i32.reshape(-1)  # [2*Bp], row-major: [n0, f0, n1, f1, ...]

    grid_spec = pltpu.PrefetchScalarGridSpec(
        num_scalar_prefetch=1,  # x_flat lands in SMEM
        grid=(num_tiles,),
        in_specs=[
            pl.BlockSpec(memory_space=pltpu.MemorySpace.VMEM),
            pl.BlockSpec(memory_space=pltpu.MemorySpace.VMEM),
        ],
        out_specs=[
            pl.BlockSpec((TB, H), lambda i, x_smem: (i, 0)),
            pl.BlockSpec((TB, H), lambda i, x_smem: (i, 0)),
        ],
    )

    out_node, out_feat = pl.pallas_call(
        _bi_embedding_gather_kernel,
        out_shape=(jax.ShapeDtypeStruct((Bp, H), out_dtype),
                   jax.ShapeDtypeStruct((Bp, H), out_dtype)),
        grid_spec=grid_spec,
        compiler_params=pltpu.CompilerParams(
            dimension_semantics=(semantics,),
            vmem_limit_bytes=vmem_limit,
        ),
    )(x_flat, node_table, feat_table)
    # TODO(synk): for tables too large for VMEM residency, switch to a streamed
    # HBM row gather (memory_space=pl.ANY + double-buffered make_async_copy),
    # which moves only ~B*2H*itemsize instead of the whole tables per call.

    return jnp.concatenate([out_node, out_feat], axis=-1)[:B]


if __name__ == "__main__":
    # Module hyper-parameters (small, deterministic).
    n_nodes, n_features, hidden = 16, 12, 32
    batch = 8

    key = jax.random.PRNGKey(0)
    k_node, k_feat, k_x0, k_x1 = jax.random.split(key, 4)

    # nn.Embedding default init: N(0, 1).
    node_table = jax.random.normal(k_node, (n_nodes, hidden), dtype=jnp.float32)
    feat_table = jax.random.normal(k_feat, (n_features, hidden), dtype=jnp.float32)

    x = jnp.stack(
        [
            jax.random.randint(k_x0, (batch,), 0, n_nodes, dtype=jnp.int32),
            jax.random.randint(k_x1, (batch,), 0, n_features, dtype=jnp.int32),
        ],
        axis=1,
    )  # [B, 2]

    # Pure-JAX reference for correctness.
    ref = jnp.concatenate([node_table[x[:, 0]], feat_table[x[:, 1]]], axis=-1)

    # Path A: one-hot MXU gather (default for small vocabularies).
    out = jax.block_until_ready(bi_embedding_cat(x, node_table, feat_table))
    assert out.shape == (batch, 2 * hidden)
    assert jnp.allclose(out, ref), "one-hot path mismatch vs reference"

    # Path B: VMEM-resident row-gather fallback (forced, to exercise it too).
    out2 = jax.block_until_ready(
        bi_embedding_cat(x, node_table, feat_table, onehot_max_vocab=0))
    assert out2.shape == (batch, 2 * hidden)
    assert jnp.allclose(out2, ref), "row-gather path mismatch vs reference"

    print("KERNEL_OK")
</pallas_src>

<mosaic_0001>
module attributes {stable_mosaic.version = 11 : i64} {
  func.func @_bi_embedding_onehot_kernel(%arg0: i32, %arg1: memref<8x2xi32, #tpu.memory_space<vmem>>, %arg2: memref<128x32xf32, #tpu.memory_space<vmem>>, %arg3: memref<128x32xf32, #tpu.memory_space<vmem>>, %arg4: memref<8x64xf32, #tpu.memory_space<vmem>>) attributes {dimension_semantics = [#tpu.dimension_semantics<parallel>], iteration_bounds = array<i64: 1>, scalar_prefetch = 0 : i64, scratch_operands = 0 : i64, tpu.core_type = #tpu.core_type<tc>, window_params = [{transform_indices = @transform_0, window_bounds = array<i64: 8, 2>}, {pipeline_mode = #tpu.pipeline_mode<synchronous>, transform_indices = @transform_1, window_bounds = array<i64: 128, 32>}, {pipeline_mode = #tpu.pipeline_mode<synchronous>, transform_indices = @transform_2, window_bounds = array<i64: 128, 32>}, {transform_indices = @transform_3, window_bounds = array<i64: 8, 64>}]} {
    %c0 = arith.constant 0 : index
    %c0_0 = arith.constant 0 : index
    %0 = vector.load %arg1[%c0, %c0_0] : memref<8x2xi32, #tpu.memory_space<vmem>>, vector<8x1xi32>
    %c0_1 = arith.constant 0 : index
    %c1 = arith.constant 1 : index
    %1 = vector.load %arg1[%c0_1, %c1] : memref<8x2xi32, #tpu.memory_space<vmem>>, vector<8x1xi32>
    %2 = tpu.iota {dimensions = array<i32: 1>} : vector<8x128xi32>
    %3 = vector.broadcast %0 : vector<8x1xi32> to vector<8x128xi32>
    %4 = arith.cmpi eq, %2, %3 : vector<8x128xi32>
    %5 = arith.extui %4 : vector<8x128xi1> to vector<8x128xi32>
    %6 = arith.sitofp %5 : vector<8x128xi32> to vector<8x128xf32>
    %7 = tpu.iota {dimensions = array<i32: 1>} : vector<8x128xi32>
    %8 = vector.broadcast %1 : vector<8x1xi32> to vector<8x128xi32>
    %9 = arith.cmpi eq, %7, %8 : vector<8x128xi32>
    %10 = arith.extui %9 : vector<8x128xi1> to vector<8x128xi32>
    %11 = arith.sitofp %10 : vector<8x128xi32> to vector<8x128xf32>
    %c0_2 = arith.constant 0 : index
    %c0_3 = arith.constant 0 : index
    %12 = vector.load %arg2[%c0_2, %c0_3] : memref<128x32xf32, #tpu.memory_space<vmem>>, vector<128x32xf32>
    %cst = arith.constant dense<0.000000e+00> : vector<8x32xf32>
    %13 = tpu.matmul %6, %12, %cst {dimension_numbers = #tpu.dot_dimension_numbers<[1], [0], [0], [1], [0, 0, 1, 1], [], []>} : vector<8x128xf32>, vector<128x32xf32>, vector<8x32xf32> -> vector<8x32xf32>
    %c0_4 = arith.constant 0 : index
    %c0_5 = arith.constant 0 : index
    %14 = vector.load %arg3[%c0_4, %c0_5] : memref<128x32xf32, #tpu.memory_space<vmem>>, vector<128x32xf32>
    %cst_6 = arith.constant dense<0.000000e+00> : vector<8x32xf32>
    %15 = tpu.matmul %11, %14, %cst_6 {dimension_numbers = #tpu.dot_dimension_numbers<[1], [0], [0], [1], [0, 0, 1, 1], [], []>} : vector<8x128xf32>, vector<128x32xf32>, vector<8x32xf32> -> vector<8x32xf32>
    %c0_7 = arith.constant 0 : index
    %c0_8 = arith.constant 0 : index
    %16 = vector.load %arg4[%c0_7, %c0_8] : memref<8x64xf32, #tpu.memory_space<vmem>>, vector<8x32xf32>
    tpu.vector_store %arg4[%c0_7, %c0_8], %13 {strides = array<i32>} : memref<8x64xf32, #tpu.memory_space<vmem>>, vector<8x32xf32>,
    %c0_9 = arith.constant 0 : index
    %c32 = arith.constant 32 : index
    %17 = vector.load %arg4[%c0_9, %c32] : memref<8x64xf32, #tpu.memory_space<vmem>>, vector<8x32xf32>
    tpu.vector_store %arg4[%c0_9, %c32], %15 {strides = array<i32>} : memref<8x64xf32, #tpu.memory_space<vmem>>, vector<8x32xf32>,
    return
  }
  func.func @transform_0(%arg0: i32) -> (i32, i32) {
    %c0_i32 = arith.constant 0 : i32
    %c0_i32_0 = arith.constant 0 : i32
    return %arg0, %c0_i32 : i32, i32
  }
  func.func @transform_1(%arg0: i32) -> (i32, i32) {
    %c0_i32 = arith.constant 0 : i32
    %c0_i32_0 = arith.constant 0 : i32
    %c0_i32_1 = arith.constant 0 : i32
    return %c0_i32, %c0_i32_0 : i32, i32
  }
  func.func @transform_2(%arg0: i32) -> (i32, i32) {
    %c0_i32 = arith.constant 0 : i32
    %c0_i32_0 = arith.constant 0 : i32
    %c0_i32_1 = arith.constant 0 : i32
    return %c0_i32, %c0_i32_0 : i32, i32
  }
  func.func @transform_3(%arg0: i32) -> (i32, i32) {
    %c0_i32 = arith.constant 0 : i32
    %c0_i32_0 = arith.constant 0 : i32
    return %arg0, %c0_i32 : i32, i32
  }
}

</mosaic_0001>

<bundles_post_ra>
// kernel: tpu_custom_call.1
= control target key start
LH: loop header
LB: loop body
LE: loop exit
PB: predicated region body
PF: predicated region fallthrough
CT: control target
= control target key end

     0   :  { %v164_v3 = vmov 1   ;;  %s291_s0 = inlined_call_operand.vmem [shape: s32[8,2], index: 0, kind: input, shape index: {}]   ;;  %s292_s1 = inlined_call_operand.vmem [shape: f32[128,32], index: 1, kind: input, shape index: {}]   ;;  %s293_s2 = inlined_call_operand.vmem [shape: f32[128,32], index: 2, kind: input, shape index: {}]   ;;  %s294_s3 = inlined_call_operand.hbm [shape: f32[8,64], index: 3, kind: output, shape index: {}]  }
   0x1   :  { %v15_v0 = vld [vmem:[%s291_s0] sm:$0xff]  ;;  %v81_v1 = vld [vmem:[%s293_s2 + $0x78] sm:$0xff]  ;;  %v80_v2 = vld [vmem:[%s293_s2 + $0x70] sm:$0xff]  ;;  %135 = vset.pattern.permute.xlu0 %v164_v3 }
   0x2   :  { %82 = vmatpush.msra.mxu1 %v81_v1  ;;  %25 = vperm.xlu0 %135, %v15_v0   ;;  %v79_v4 = vld [vmem:[%s293_s2 + $0x68] sm:$0xff]  ;;  %v78_v5 = vld [vmem:[%s293_s2 + $0x60] sm:$0xff] }
   0x4   :  { %83 = vmatpush.msra.mxu1 %v80_v2 }
   0x6   :  { %84 = vmatpush.msra.mxu1 %v79_v4 }
   0x7   :  { %8 = vsyncpa [#allocation3], 0  ;;  %v77_v6 = vld [vmem:[%s293_s2 + $0x58] sm:$0xff]  ;;  %v76_v7 = vld [vmem:[%s293_s2 + $0x50] sm:$0xff]  ;;  %v165_v9 = vmov 0   ;;  %v16_v32 = vlaneseq  ;;  %v166_v38 = vmov 1.0  }
   0x8   :  { %85 = vmatpush.msra.mxu1 %v78_v5  ;;  %v75_v8 = vld [vmem:[%s293_s2 + $0x48] sm:$0xff]  ;;  %v74_v10 = vld [vmem:[%s293_s2 + $0x40] sm:$0xff]  ;;  %v73_v11 = vld [vmem:[%s293_s2 + $0x38] sm:$0xff]  ;;  %s167_s21 = smov 32   ;;  %vm102_vm2 = vcmask 261120   ;;  %s168_s0 = smov [#allocation2]  }
   0x9   :  { %v72_v12 = vld [vmem:[%s293_s2 + $0x30] sm:$0xff]  ;;  %v71_v13 = vld [vmem:[%s293_s2 + $0x28] sm:$0xff]  ;;  %v70_v14 = vld [vmem:[%s293_s2 + $0x20] sm:$0xff]  ;;  %v17_v35 = vand.u32 127, %v16_v32  ;;  %s115_s22 = sshll.u32 %s168_s0, 4  ;;  %vm108_vm3 = vcmask 523520   ;;  %s116_s22 = int_to_ptr.vmem [resolvable:$true] %s115_s22 }
   0xa   :  { %86 = vmatpush.msra.mxu1 %v77_v6  ;;  %136 = vset.pattern.permute.xlu0 %v165_v9  ;;  %v69_v15 = vld [vmem:[%s293_s2 + $0x18] sm:$0xff]  ;;  %v68_v16 = vld [vmem:[%s293_s2 + $0x10] sm:$0xff]  ;;  %v67_v17 = vld [vmem:[%s293_s2 + $0x8] sm:$0xff] }
   0xb   :  { %19 = vperm.xlu0 %136, %v15_v0   ;;  %v66_v18 = vld [vmem:[%s293_s2] sm:$0xff]  ;;  %v45_v19 = vld [vmem:[%s292_s1 + $0x78] sm:$0xff]  ;;  %v44_v20 = vld [vmem:[%s292_s1 + $0x70] sm:$0xff] }
   0xc   :  { %87 = vmatpush.msra.mxu1 %v76_v7  ;;  %46 = vmatpush.msra.mxu0 %v45_v19  ;;  %v43_v21 = vld [vmem:[%s292_s1 + $0x68] sm:$0xff]  ;;  %v42_v22 = vld [vmem:[%s292_s1 + $0x60] sm:$0xff]  ;;  %v41_v23 = vld [vmem:[%s292_s1 + $0x58] sm:$0xff] }
   0xd   :  { %v40_v24 = vld [vmem:[%s292_s1 + $0x50] sm:$0xff]  ;;  %v39_v25 = vld [vmem:[%s292_s1 + $0x48] sm:$0xff]  ;;  %v38_v26 = vld [vmem:[%s292_s1 + $0x40] sm:$0xff] }
   0xe   :  { %88 = vmatpush.msra.mxu1 %v75_v8  ;;  %47 = vmatpush.msra.mxu0 %v44_v20  ;;  %v37_v27 = vld [vmem:[%s292_s1 + $0x38] sm:$0xff]  ;;  %v36_v28 = vld [vmem:[%s292_s1 + $0x30] sm:$0xff]  ;;  %v35_v29 = vld [vmem:[%s292_s1 + $0x28] sm:$0xff] }
   0xf   :  { %v34_v30 = vld [vmem:[%s292_s1 + $0x20] sm:$0xff]  ;;  %v33_v31 = vld [vmem:[%s292_s1 + $0x18] sm:$0xff]  ;;  %v32_v33 = vld [vmem:[%s292_s1 + $0x10] sm:$0xff] }
  0x10   :  { %89 = vmatpush.msra.mxu1 %v74_v10  ;;  %48 = vmatpush.msra.mxu0 %v43_v21  ;;  %v31_v34 = vld [vmem:[%s292_s1 + $0x8] sm:$0xff]  ;;  %v30_v36 = vld [vmem:[%s292_s1] sm:$0xff]  ;;  %s117_s1 = sshll.u32 %s294_s3, 4  ;;  %s118_s1 = int_to_ptr.hbm [resolvable:$true] %s117_s1 }
  0x12   :  { %90 = vmatpush.msra.mxu1 %v73_v11  ;;  %49 = vmatpush.msra.mxu0 %v42_v22 }
  0x13   :  { %137 = vset.pattern.permute.xlu0 %v164_v3 }
  0x14   :  { %91 = vmatpush.msra.mxu1 %v72_v12  ;;  %50 = vmatpush.msra.mxu0 %v41_v23 }
  0x16   :  { %92 = vmatpush.msra.mxu1 %v71_v13  ;;  %51 = vmatpush.msra.mxu0 %v40_v24 }
  0x18   :  { %93 = vmatpush.msra.mxu1 %v70_v14  ;;  %52 = vmatpush.msra.mxu0 %v39_v25 }
  0x1a   :  { %94 = vmatpush.msra.mxu1 %v69_v15  ;;  %53 = vmatpush.msra.mxu0 %v38_v26 }
  0x1c   :  { %95 = vmatpush.msra.mxu1 %v68_v16  ;;  %54 = vmatpush.msra.mxu0 %v37_v27 }
  0x1e   :  { %96 = vmatpush.msra.mxu1 %v67_v17  ;;  %55 = vmatpush.msra.mxu0 %v36_v28 }
  0x20   :  { %97 = vmatpush.msra.mxu1 %v66_v18  ;;  %56 = vmatpush.msra.mxu0 %v35_v29 }
  0x22   :  { %57 = vmatpush.msra.mxu0 %v34_v30 }
  0x24   :  { %58 = vmatpush.msra.mxu0 %v33_v31 }
  0x26   :  { %59 = vmatpush.msra.mxu0 %v32_v33 }
  0x28   :  { %60 = vmatpush.msra.mxu0 %v31_v34 }
  0x2a   :  { %61 = vmatpush.msra.mxu0 %v30_v36 }
  0x74   :  { %v26_v37 = vpop.permute.xlu0 %25 }
  0x75   :  { %vm27_vm0 = vcmp.eq.s32.totalorder %v17_v35, %v26_v37 }
  0x76   :  { %129 = vmatmul.msk.f32.vlgmr.msra.gmra.mxu1 %vm27_vm0, %v166_v38 }
  0x7d   :  { %v20_v39 = vpop.permute.xlu0 %19 }
  0x7e   :  { %vm21_vm1 = vcmp.eq.s32.totalorder %v17_v35, %v20_v39 }
  0x7f   :  { %128 = vmatmul.msk.f32.vlgmr.msra.gmra.mxu0 %vm21_vm1, %v166_v38 }
  0xf3   :  { %v99_v40 = vpop.f32.mrf.mxu1 }
  0xf4   :  { %105 = vrot.lane.b32.xlu1 %v99_v40, %s167_s21 }
  0xfc   :  { %v63_v41 = vpop.f32.mrf.mxu0 }
  0xfd   :  { %103 = vst.msk [vmem:[#allocation2] sm:$0xff] %vm102_vm2, %v63_v41 }
 0x166   :  { %v106_v42 = vpop.permute.xlu1 %105 }
 0x167   :  { %109 = vst.msk [vmem:[#allocation2] sm:$0xff] %vm108_vm3, %v106_v42 }
 0x168   :  { %120 = dma.vmem_to_hbm [thread:$0]  %s116_s22, 128, %s118_s1, [#allocation3]  }
 0x169   :  { %162 = dma.done.wait [#allocation3], 128  }
 0x16a   :  { %163 = vsyncadd [#allocation3], 4294967168 }
 0x16b   :  { %125 = vsyncpa [#allocation3], 1 }

</bundles_post_ra>
